<compile_context>
chip_gen: v7x
topology: tpu7x:2x2x1
jax: 0.10.0
libtpu: 0.0.40
codegen_flags: <defaults>
</compile_context>

<pallas_src>
import functools

import jax
import jax.numpy as jnp
from jax import lax
from jax.experimental import pallas as pl
from jax.experimental.pallas import tpu as pltpu


def _label_smoothing_kernel(pred_ref, mask_ref, target_ref, out_ref, *,
                            confidence, smooth_val, n_rows):
    i = pl.program_id(0)

    @pl.when(i == 0)
    def _init():
        out_ref[...] = jnp.zeros_like(out_ref)

    logits = pred_ref[...].astype(jnp.float32)                 # (TILE_N, C)
    tn, c = logits.shape

    # Numerically stable logsumexp per row (class axis = lane axis).
    row_max = jnp.max(logits, axis=-1, keepdims=True)          # (TILE_N, 1)
    shifted = logits - row_max
    lse = jnp.log(jnp.sum(jnp.exp(shifted), axis=-1, keepdims=True))
    log_z = row_max + lse                                      # logsumexp(logits)

    # Algebraic decomposition of sum_c(true_dist * logp):
    #   = smooth_val * sum_c(logp) + (confidence - smooth_val) * logp[target]
    #   sum_c(logp)  = sum_c(logits) - C * log_z
    #   logp[target] = logits[target] - log_z
    sum_logits = jnp.sum(logits, axis=-1, keepdims=True)       # (TILE_N, 1)
    col = lax.broadcasted_iota(jnp.int32, (tn, c), 1)          # (TILE_N, C)
    tgt = target_ref[...]                                      # (TILE_N, 1) i32
    logit_tgt = jnp.sum(jnp.where(col == tgt, logits, 0.0),
                        axis=-1, keepdims=True)                # (TILE_N, 1)

    sum_logp = sum_logits - jnp.float32(c) * log_z
    logp_tgt = logit_tgt - log_z
    row_loss = -(jnp.float32(confidence - smooth_val) * logp_tgt
                 + jnp.float32(smooth_val) * sum_logp)         # (TILE_N, 1)

    # Mask applied after the per-row reduction; padded rows have mask == 0.
    mask = mask_ref[...].astype(jnp.float32)                   # (TILE_N, 1)
    out_ref[...] += jnp.sum(row_loss * mask, keepdims=True)    # (1, 1)

    @pl.when(i == pl.num_programs(0) - 1)
    def _finalize():
        out_ref[...] = out_ref[...] * jnp.float32(1.0 / n_rows)


def label_smoothing_loss_audio_old(pred, target, mask, *, classes,
                                   smoothing=0.0, tile_n=None):
    """Scalar label-smoothing loss; pred (N, C), target (N,) int, mask (N,)."""
    n, c = pred.shape
    assert c == classes
    confidence = 1.0 - smoothing
    smooth_val = smoothing / (classes - 1)

    # Row-tile size: keep the double-buffered pred tile comfortably inside VMEM
    # on every generation (v7x has only 64 MiB physical VMEM) while staying big
    # enough to amortize per-grid-step overhead.  ~4 MiB per pred tile.
    if tile_n is None:
        bytes_per_row = c * pred.dtype.itemsize
        tile_n = (4 * 1024 * 1024) // max(bytes_per_row, 1)
        tile_n = max(8, min(512, tile_n))
    tile_n = max(8, (min(int(tile_n), n + 7) // 8) * 8)        # multiple of 8

    num_tiles = pl.cdiv(n, tile_n)
    n_pad = num_tiles * tile_n
    if n_pad != n:
        pad = n_pad - n
        pred = jnp.pad(pred, ((0, pad), (0, 0)))
        target = jnp.pad(target, (0, pad))
        mask = jnp.pad(mask, (0, pad))      # padded rows masked out (mask=0)

    target2d = target.astype(jnp.int32).reshape(n_pad, 1)
    mask2d = mask.astype(jnp.float32).reshape(n_pad, 1)

    # TODO(synk): mask/target could ride in SMEM via PrefetchScalarGridSpec to
    # free vector load slots; kept as thin (TILE_N, 1) VMEM blocks for simplicity.

    kernel = functools.partial(_label_smoothing_kernel,
                               confidence=confidence,
                               smooth_val=smooth_val,
                               n_rows=n)

    out = pl.pallas_call(
        kernel,
        out_shape=jax.ShapeDtypeStruct((1, 1), jnp.float32),
        grid=(num_tiles,),
        in_specs=[
            pl.BlockSpec((tile_n, c), lambda i: (i, 0)),
            pl.BlockSpec((tile_n, 1), lambda i: (i, 0)),
            pl.BlockSpec((tile_n, 1), lambda i: (i, 0)),
        ],
        out_specs=pl.BlockSpec((1, 1), lambda i: (0, 0)),
        compiler_params=pltpu.CompilerParams(
            dimension_semantics=("arbitrary",)),   # output block is an accumulator
    )(pred, mask2d, target2d)
    return out[0, 0]


def _reference(pred, target, mask, classes, smoothing):
    """Pure-JAX reference mirroring the PyTorch module."""
    confidence = 1.0 - smoothing
    logp = jax.nn.log_softmax(pred.astype(jnp.float32), axis=-1)
    logp = (mask * logp.T).T
    true_dist = jnp.full_like(logp, smoothing / (classes - 1))
    true_dist = true_dist.at[jnp.arange(pred.shape[0]), target].set(confidence)
    return jnp.mean(jnp.sum(-true_dist * logp, axis=-1))


if __name__ == "__main__":
    key = jax.random.PRNGKey(0)
    N, C = 20, 128          # rows (not a tile multiple -> exercises padding), classes
    smoothing = 0.1
    TILE_N = 8              # small tile so the demo exercises grid accumulation

    k1, k2, k3 = jax.random.split(key, 3)
    pred = jax.random.normal(k1, (N, C), dtype=jnp.float32)
    target = jax.random.randint(k2, (N,), 0, C, dtype=jnp.int32)
    mask = (jax.random.uniform(k3, (N,)) > 0.25).astype(jnp.float32)

    loss = label_smoothing_loss_audio_old(pred, target, mask,
                                          classes=C, smoothing=smoothing,
                                          tile_n=TILE_N)
    loss = jax.block_until_ready(loss)

    ref = _reference(pred, target, mask, C, smoothing)
    assert jnp.allclose(loss, ref, rtol=1e-5, atol=1e-5), (loss, ref)
    print("KERNEL_OK")
</pallas_src>

<mosaic_0001>
module attributes {stable_mosaic.version = 11 : i64} {
  func.func @_label_smoothing_kernel(%arg0: i32, %arg1: memref<8x128xf32, #tpu.memory_space<vmem>>, %arg2: memref<8x1xf32, #tpu.memory_space<vmem>>, %arg3: memref<8x1xi32, #tpu.memory_space<vmem>>, %arg4: memref<1x1xf32, #tpu.memory_space<vmem>>) attributes {dimension_semantics = [#tpu.dimension_semantics<arbitrary>], iteration_bounds = array<i64: 3>, scalar_prefetch = 0 : i64, scratch_operands = 0 : i64, tpu.core_type = #tpu.core_type<tc>, window_params = [{transform_indices = @transform_0, window_bounds = array<i64: 8, 128>}, {transform_indices = @transform_1, window_bounds = array<i64: 8, 1>}, {transform_indices = @transform_2, window_bounds = array<i64: 8, 1>}, {pipeline_mode = #tpu.pipeline_mode<synchronous>, transform_indices = @transform_3, window_bounds = array<i64: 1, 1>}]} {
    %c0_i32 = arith.constant 0 : i32
    %0 = arith.cmpi eq, %arg0, %c0_i32 : i32
    %1 = arith.extui %0 : i1 to i32
    %c0_i32_0 = arith.constant 0 : i32
    %2 = arith.cmpi ne, %1, %c0_i32_0 : i32
    scf.if %2 {
      %cst_20 = arith.constant 0.000000e+00 : f32
      %47 = vector.broadcast %cst_20 : f32 to vector<1x1xf32>
      %c0_21 = arith.constant 0 : index
      %c0_22 = arith.constant 0 : index
      %48 = vector.load %arg4[%c0_21, %c0_22] : memref<1x1xf32, #tpu.memory_space<vmem>>, vector<1x1xf32>
      tpu.vector_store %arg4[%c0_21, %c0_22], %47 {strides = array<i32>} : memref<1x1xf32, #tpu.memory_space<vmem>>, vector<1x1xf32>,
    } else {
    }
    %c0 = arith.constant 0 : index
    %c0_1 = arith.constant 0 : index
    %3 = vector.load %arg1[%c0, %c0_1] : memref<8x128xf32, #tpu.memory_space<vmem>>, vector<8x128xf32>
    %cst = arith.constant dense<0xFF800000> : vector<8xf32>
    %4 = vector.multi_reduction <maximumf>, %3, %cst [1] : vector<8x128xf32> to vector<8xf32>
    %5 = vector.shape_cast %4 : vector<8xf32> to vector<8x1xf32>
    %6 = vector.broadcast %5 : vector<8x1xf32> to vector<8x128xf32>
    %7 = arith.subf %3, %6 : vector<8x128xf32>
    %8 = math.exp %7 : vector<8x128xf32>
    %cst_2 = arith.constant dense<0.000000e+00> : vector<8xf32>
    %9 = vector.multi_reduction <add>, %8, %cst_2 [1] : vector<8x128xf32> to vector<8xf32>
    %10 = vector.shape_cast %9 : vector<8xf32> to vector<8x1xf32>
    %11 = math.log %10 : vector<8x1xf32>
    %12 = arith.addf %5, %11 : vector<8x1xf32>
    %cst_3 = arith.constant dense<0.000000e+00> : vector<8xf32>
    %13 = vector.multi_reduction <add>, %3, %cst_3 [1] : vector<8x128xf32> to vector<8xf32>
    %14 = vector.shape_cast %13 : vector<8xf32> to vector<8x1xf32>
    %15 = tpu.iota {dimensions = array<i32: 1>} : vector<8x128xi32>
    %c0_4 = arith.constant 0 : index
    %c0_5 = arith.constant 0 : index
    %16 = vector.load %arg3[%c0_4, %c0_5] : memref<8x1xi32, #tpu.memory_space<vmem>>, vector<8x1xi32>
    %17 = vector.broadcast %16 : vector<8x1xi32> to vector<8x128xi32>
    %18 = arith.cmpi eq, %15, %17 : vector<8x128xi32>
    %cst_6 = arith.constant 0.000000e+00 : f32
    %19 = vector.broadcast %cst_6 : f32 to vector<8x128xf32>
    %20 = arith.select %18, %3, %19 : vector<8x128xi1>, vector<8x128xf32>
    %cst_7 = arith.constant dense<0.000000e+00> : vector<8xf32>
    %21 = vector.multi_reduction <add>, %20, %cst_7 [1] : vector<8x128xf32> to vector<8xf32>
    %22 = vector.shape_cast %21 : vector<8xf32> to vector<8x1xf32>
    %cst_8 = arith.constant 1.280000e+02 : f32
    %23 = vector.broadcast %cst_8 : f32 to vector<8x1xf32>
    %24 = arith.mulf %23, %12 : vector<8x1xf32>
    %25 = arith.subf %14, %24 : vector<8x1xf32>
    %26 = arith.subf %22, %12 : vector<8x1xf32>
    %cst_9 = arith.constant 0.899212599 : f32
    %27 = vector.broadcast %cst_9 : f32 to vector<8x1xf32>
    %28 = arith.mulf %27, %26 : vector<8x1xf32>
    %cst_10 = arith.constant 7.87401571E-4 : f32
    %29 = vector.broadcast %cst_10 : f32 to vector<8x1xf32>
    %30 = arith.mulf %29, %25 : vector<8x1xf32>
    %31 = arith.addf %28, %30 : vector<8x1xf32>
    %cst_11 = arith.constant 0.000000e+00 : f32
    %32 = vector.broadcast %cst_11 : f32 to vector<8x1xf32>
    %33 = arith.subf %32, %31 : vector<8x1xf32>
    %c0_12 = arith.constant 0 : index
    %c0_13 = arith.constant 0 : index
    %34 = vector.load %arg2[%c0_12, %c0_13] : memref<8x1xf32, #tpu.memory_space<vmem>>, vector<8x1xf32>
    %c0_14 = arith.constant 0 : index
    %c0_15 = arith.constant 0 : index
    %35 = vector.load %arg4[%c0_14, %c0_15] : memref<1x1xf32, #tpu.memory_space<vmem>>, vector<1x1xf32>
    %36 = arith.mulf %33, %34 : vector<8x1xf32>
    %37 = vector.shape_cast %36 : vector<8x1xf32> to vector<1x8x1xf32>
    %cst_16 = arith.constant dense<0.000000e+00> : vector<1xf32>
    %38 = vector.multi_reduction <add>, %37, %cst_16 [1, 2] : vector<1x8x1xf32> to vector<1xf32>
    %39 = vector.shape_cast %38 : vector<1xf32> to vector<1x1x1xf32>
    %40 = vector.extract %39[0, 0, 0] : f32 from vector<1x1x1xf32>
    %41 = vector.broadcast %40 : f32 to vector<1x1xf32>
    %42 = arith.addf %35, %41 : vector<1x1xf32>
    %c0_17 = arith.constant 0 : index
    %c0_18 = arith.constant 0 : index
    %43 = vector.load %arg4[%c0_17, %c0_18] : memref<1x1xf32, #tpu.memory_space<vmem>>, vector<1x1xf32>
    tpu.vector_store %arg4[%c0_17, %c0_18], %42 {strides = array<i32>} : memref<1x1xf32, #tpu.memory_space<vmem>>, vector<1x1xf32>,
    %c2_i32 = arith.constant 2 : i32
    %44 = arith.cmpi eq, %arg0, %c2_i32 : i32
    %45 = arith.extui %44 : i1 to i32
    %c0_i32_19 = arith.constant 0 : i32
    %46 = arith.cmpi ne, %45, %c0_i32_19 : i32
    scf.if %46 {
      %c0_20 = arith.constant 0 : index
      %c0_21 = arith.constant 0 : index
      %47 = vector.load %arg4[%c0_20, %c0_21] : memref<1x1xf32, #tpu.memory_space<vmem>>, vector<1x1xf32>
      %cst_22 = arith.constant 5.000000e-02 : f32
      %48 = vector.broadcast %cst_22 : f32 to vector<1x1xf32>
      %49 = arith.mulf %47, %48 : vector<1x1xf32>
      %c0_23 = arith.constant 0 : index
      %c0_24 = arith.constant 0 : index
      %50 = vector.load %arg4[%c0_23, %c0_24] : memref<1x1xf32, #tpu.memory_space<vmem>>, vector<1x1xf32>
      tpu.vector_store %arg4[%c0_23, %c0_24], %49 {strides = array<i32>} : memref<1x1xf32, #tpu.memory_space<vmem>>, vector<1x1xf32>,
    } else {
    }
    return
  }
  func.func @transform_0(%arg0: i32) -> (i32, i32) {
    %c0_i32 = arith.constant 0 : i32
    %c0_i32_0 = arith.constant 0 : i32
    return %arg0, %c0_i32 : i32, i32
  }
  func.func @transform_1(%arg0: i32) -> (i32, i32) {
    %c0_i32 = arith.constant 0 : i32
    %c0_i32_0 = arith.constant 0 : i32
    return %arg0, %c0_i32 : i32, i32
  }
  func.func @transform_2(%arg0: i32) -> (i32, i32) {
    %c0_i32 = arith.constant 0 : i32
    %c0_i32_0 = arith.constant 0 : i32
    return %arg0, %c0_i32 : i32, i32
  }
  func.func @transform_3(%arg0: i32) -> (i32, i32) {
    %c0_i32 = arith.constant 0 : i32
    %c0_i32_0 = arith.constant 0 : i32
    %c0_i32_1 = arith.constant 0 : i32
    return %c0_i32, %c0_i32_0 : i32, i32
  }
}

</mosaic_0001>

<bundles_post_ra>
// kernel: tpu_custom_call.1
= control target key start
LH: loop header
LB: loop body
LE: loop exit
PB: predicated region body
PF: predicated region fallthrough
CT: control target
= control target key end

     0   :  { %8 = vsyncpa [#allocation3], 0  ;;  %s417_s12 = smov 0   ;;  %s476_s0 = inlined_call_operand.vmem [shape: f32[24,128], index: 0, kind: input, shape index: {}]   ;;  %s477_s1 = inlined_call_operand.vmem [shape: f32[24,1], index: 1, kind: input, shape index: {}]   ;;  %s478_s2 = inlined_call_operand.vmem [shape: s32[24,1], index: 2, kind: input, shape index: {}]   ;;  %s479_s3 = inlined_call_operand.hbm [shape: f32[1,1], index: 3, kind: output, shape index: {}]  }
   0x1 LB: > { %s423_s13 = sadd.s32 4294967295, %s392_s12   ;;  %p322_p0 = scmp.ge.s32.totalorder %s392_s12, 1  ;;  %s392_s12 = sphi %s417_s12, %s14_s12  }
   0x2   : > { %p150_p1 = scmp.lt.s32.totalorder %s392_s12, 4 }
   0x4   : > { %p151_p2 = pnand %p322_p0, %p150_p1 }
   0x5   : > { %p176_p3 = scmp.lt.s32.totalorder (!%p151_p2), %s423_s13, 2  ;;  %p326_p4 = scmp.ne.s32.totalorder (!%p151_p2), %s423_s13, 0 }
   0x6   : > { %154 = sbr.rel (%p151_p2) target bundleno = 592 (0x250), region = 32 }
   0xd   : > { %s177_s14 = scalar_select %p176_p3, %s423_s13, 2 }
   0xe   : > { %191 = sbr.rel (%p326_p4) target bundleno = 21 (0x15), region = 36  ;;  %vm192_vm0 = vcmask (!%p326_p4), 0   ;;  %v394_v0 = vmov (!%p326_p4), 0.0  }
   0xf   : > { %s429_s15 = sshll.u32 %s177_s14, 3  ;;  %193 = vst.msk [vmem:[#allocation2] sm:$0x1] (!%p326_p4), %vm192_vm0, %v394_v0 }
  0x10   : > { %s179_s18 = scalar_lea.vmem %s476_s0, %s429_s15  ;;  %s183_s21 = scalar_lea.vmem %s477_s1, %s429_s15 }
  0x11   : > { %s187_s24 = scalar_lea.vmem %s478_s2, %s429_s15 }
  0x15 PF: > { %v194_v1 = vld [vmem:[%s179_s18] sm:$0xff]  ;;  %v395_v2 = vmov 0   ;;  %v207_v7 = vlaneseq  ;;  %vm227_vm2 = vcmask 7168   ;;  %vm240_vm3 = vcmask 0   ;;  %p327_p5 = scmp.ne.s32.totalorder %s423_s13, 2 }
  0x16   : > { %195 = vmax.xlane.f32.xlu0 %v194_v1  ;;  %v209_v3 = vld [vmem:[%s187_s24] sm:$0xff] }
  0x17   : > { %351 = vset.pattern.permute.xlu0 %v395_v2  ;;  %v208_v8 = vand.u32 127, %v207_v7  ;;  %v224_v24 = vld [vmem:[%s183_s21] sm:$0xff] }
  0x18   : > { %v225_v35 = vld [vmem:[#allocation2] sm:$0x1] }
  0x2c   : > { %211 = vperm.xlu0 %351, %v209_v3  }
  0xa3   : > { %v196_v4 = vpop.xlane.xlu0 %195 }
  0xa4   : > { %v197_v5 = vsub.f32 %v194_v1, %v196_v4 }
  0xa6   : > { %v198_v6 = vmul.f32 1.442695, %v197_v5 }
  0xa8   : > { %352 = vpow2.f32 %v198_v6 }
  0xab   : > { %v212_v10 = vpop.permute.xlu0 %211 }
  0xac   : > { %vm213_vm1 = vcmp.eq.s32.totalorder %v208_v8, %v212_v10 }
  0xad   : > { %v214_v11 = vsel %vm213_vm1, %v194_v1, 0.0 }
  0xb2   : > { %v353_v9 = vpop.eup %352 }
  0xb3   : > { %200 = vadd.xlane.f32.xlu1 %v353_v9 }
  0xb7   : > { %205 = vadd.xlane.f32.xlu1 %v194_v1 }
  0xbb   : > { %215 = vadd.xlane.f32.xlu1 %v214_v11 }
 0x140   : > { %v201_v12 = vpop.xlane.xlu1 %200 }
 0x141   : > { %354 = vlog2.f32 %v201_v12 }
 0x144   : > { %v206_v13 = vpop.xlane.xlu1 %205 }
 0x148   : > { %v216_v16 = vpop.xlane.xlu1 %215 }
 0x14b   : > { %v355_v14 = vpop.eup %354 }
 0x14c   : > { %v203_v15 = vmul.f32 0.6931472, %v355_v14 }
 0x14e   : > { %v204_v17 = vadd.f32 %v203_v15, %v196_v4 }
 0x150   : > { %v217_v18 = vmul.f32 128.0, %v204_v17  ;;  %v219_v19 = vsub.f32 %v216_v16, %v204_v17 }
 0x152   : > { %v218_v20 = vsub.f32 %v206_v13, %v217_v18  ;;  %v220_v22 = vmul.f32 0.8992126, %v219_v19 }
 0x154   : > { %v221_v21 = vmul.f32 0.0007874016, %v218_v20 }
 0x156   : > { %v222_v23 = vadd.f32 %v221_v21, %v220_v22 }
 0x158   : > { %v223_v25 = vsub.f32 0.0, %v222_v23 }
 0x15a   : > { %v226_v26 = vmul.f32 %v224_v24, %v223_v25 }
 0x15c   : > { %v228_v27 = vsel %vm227_vm2, %v226_v26, 0.0 }
 0x15d   : > { %229 = vadd.xlane.f32.xlu1 %v228_v27 }
 0x1ea   : > { %v230_v28 = vpop.xlane.xlu1 %229 }
 0x1eb   : > { %v231_v29 = vrot.slane %v230_v28, 4 }
 0x1ed   : > { %v232_v30 = vadd.f32 %v231_v29, %v230_v28 }
 0x1ef   : > { %v233_v31 = vrot.slane %v232_v30, 2 }
 0x1f1   : > { %v234_v32 = vadd.f32 %v233_v31, %v232_v30 }
 0x1f3   : > { %v235_v33 = vrot.slane %v234_v32, 1 }
 0x1f5   : > { %v236_v34 = vadd.f32 %v235_v33, %v234_v32 }
 0x1f7   : > { %332 = vpush %v236_v34 }
 0x226   : > { %245 = sbr.rel (%p327_p5) target bundleno = 567 (0x237), region = 40 }
 0x228   : > { %s333_s27 = spop %332 }
 0x229   : > { %v238_v36 = vstv %s333_s27 }
 0x22a   : > { %v239_v37 = vadd.f32 %v238_v36, %v225_v35 }
 0x22c   : > { %241 = vst.msk [vmem:[#allocation2] sm:$0x1] %vm240_vm3, %v239_v37 }
 0x233   : > { %v246_v38 = vld [vmem:[#allocation2] sm:$0x1] }
 0x234   : > { %v247_v39 = vmul.f32 0.05, %v246_v38 }
 0x236   : > { %248 = vst.msk [vmem:[#allocation2] sm:$0x1] %vm240_vm3, %v247_v39 }
 0x237 PF: > { %p338_p6 = scmp.eq.s32.totalorder %s423_s13, 2  ;;  %s396_s28 = smov [#allocation2]  }
 0x238   : > { %s256_s29 = sshll.u32 %s396_s28, 4  ;;  %s257_s29 = int_to_ptr.vmem [resolvable:$true] %s256_s29 }
 0x239   : > { %s356_s30 = scalar_lea.vmem %s257_s29, 16  ;;  %s362_s4 = scalar_lea.vmem %s257_s29, 32 }
 0x23a   : > { %p357_p7 = scmp.ne.s32.totalorder %s257_s29, %s356_s30  ;;  %p363_p10 = scmp.lt.s32.totalorder %s257_s29, %s257_s29 }
 0x23b   : > { %p364_p11 = scmp.lt.s32.totalorder %s362_s4, %s356_s30 }
 0x23c   : > { %p358_p8 = pnand %p357_p7, %p338_p6 }
 0x23d   : > { %p365_p12 = por %p364_p11, %p363_p10 }
 0x23e   : > { %p359_p9 = pneg %p358_p8 }
 0x240   : > { %p366_p13 = pnand %p365_p12, %p359_p9 }
 0x242   : > { %369 = shalt.err (!%p366_p13)
}
 0x243   : > { %s370_s7 = scalar_lea.hbm %s479_s3, 16 }
 0x244   : > { %p371_p0 = scmp.ne.s32.totalorder %s479_s3, %s370_s7  ;;  %p376_p3 = scmp.lt.u32.totalorder %s370_s7, %s479_s3 }
 0x246   : > { %p372_p1 = pnand %p371_p0, %p338_p6 }
 0x248   : > { %p373_p2 = pneg %p372_p1 }
 0x24a   : > { %p378_p4 = pnand %p376_p3, %p373_p2 }
 0x24c   : > { %381 = shalt.err (!%p378_p4)
}
 0x24d   : > { %335 = dma.vmem_to_hbm [thread:$0]  (%p338_p6), %s257_s29, 16, %s479_s3, [#allocation3]  }
 0x24e   : > { %387 = dma.done.wait (%p338_p6), [#allocation3], 16  }
 0x24f   : > { %389 = vsyncadd (%p338_p6), [#allocation3], 4294967280 }
 0x250 PF: > { %s14_s12 = sadd.s32 1, %s392_s12  }
 0x251   : > { %p11_p5 = scmp.ge.s32.totalorder %s14_s12, 5  }
 0x253   :  { %13 = sbr.rel (!%p11_p5) target bundleno = 1 (0x1), region = 73 }
 0x25a   :  { %269 = vsyncpa [#allocation3], 1 }
 0x25b   :  { %271 = vsyncpa [#allocation3 + $0x1], 1 }

</bundles_post_ra>
